<compile_context>
chip_gen: v5e
topology: v5e:2x2
jax: 0.10.0
libtpu: 0.0.40
codegen_flags: <defaults>
</compile_context>

<pallas_src>
import functools

import jax
import jax.numpy as jnp
from jax.experimental import pallas as pl
from jax.experimental.pallas import tpu as pltpu


def _sse_rows_kernel(p_ref, g_ref, o_ref):
    """o[r, 0] = sum_p (p[r, p] - g[r, p])**2 for each row of the block (f32 accum)."""
    d = p_ref[...].astype(jnp.float32) - g_ref[...].astype(jnp.float32)
    o_ref[...] = jnp.sum(d * d, axis=1, keepdims=True)


def _looks_like_v7x():
    """Best-effort detection of a 2-TensorCore (v7x) chip; False on v5e/v6e/unknown."""
    try:
        kind = jax.devices()[0].device_kind.lower()
    except Exception:
        return False
    return ("v7" in kind) or ("7x" in kind)


def joints_ohkm_mse_loss(output, target, target_weight=None, *,
                         use_target_weight=True, topk=8,
                         target_block_bytes=None):
    b, j = output.shape[0], output.shape[1]
    assert topk <= j, "topk must be <= num_joints"

    # Contiguous reshapes only (free) -- no pad / astype HBM passes in the wrapper.
    p2d = output.reshape(b * j, -1)
    g2d = target.reshape(b * j, -1)
    bj, hw = p2d.shape

    v7x = _looks_like_v7x()
    if target_block_bytes is None:
        # Budget per input stream per buffer, measured on the f32 working set:
        # ~4 MiB on v5e/v6e (128 MiB physical VMEM), ~2 MiB on v7x (64 MiB physical).
        target_block_bytes = (2 if v7x else 4) * 1024 * 1024

    itemsize = jnp.dtype(p2d.dtype).itemsize
    # Sublane tile for the input dtype: 8 rows for f32, 16 for bf16/f16, 32 for int8/fp8.
    sublane = max(8, 32 // itemsize)
    # Size rows on the upcast (4-byte) footprint: in-kernel .astype(f32) materializes
    # ~f32-sized temporaries per stream regardless of the input dtype.
    rows_budget = max(1, target_block_bytes // (hw * 4))
    tr = max(sublane, (rows_budget // sublane) * sublane)
    if bj <= sublane:
        tr = bj                                   # full-dim escape for tiny inputs
    else:
        # Never collapse to a 1-step grid: cap tr at ceil(bj/2) rounded to the sublane
        # tile so the row-block axis can actually split across TensorCores on v7x.
        half = (bj + 1) // 2
        max_tr = ((half + sublane - 1) // sublane) * sublane
        tr = min(tr, max_tr)
    grid_rows = pl.cdiv(bj, tr)

    dim_sem = (pltpu.CORE_PARALLEL if v7x else pltpu.PARALLEL,)
    vmem_limit = None if v7x else 64 * 1024 * 1024

    sse = pl.pallas_call(
        _sse_rows_kernel,
        out_shape=jax.ShapeDtypeStruct((bj, 1), jnp.float32),
        grid=(grid_rows,),
        in_specs=[
            pl.BlockSpec((tr, hw), lambda i: (i, 0)),
            pl.BlockSpec((tr, hw), lambda i: (i, 0)),
        ],
        out_specs=pl.BlockSpec((tr, 1), lambda i: (i, 0)),
        compiler_params=pltpu.CompilerParams(
            dimension_semantics=dim_sem,
            vmem_limit_bytes=vmem_limit,
        ),
        cost_estimate=pl.CostEstimate(
            flops=3 * bj * hw,
            transcendentals=0,
            bytes_accessed=2 * bj * hw * itemsize + bj * 4,
        ),
    )(p2d, g2d)

    # ----- tiny O(B*J) epilogue in plain JAX (per perf review: a second pallas_call
    # launch costs more than this work; XLA fuses it) -----------------------------
    per_joint = sse.reshape(b, j) * jnp.float32(0.5 / hw)      # 0.5 * mean_p (p-g)^2
    if use_target_weight:
        assert target_weight is not None
        w = target_weight.reshape(b, j).astype(jnp.float32)
        per_joint = per_joint * (w * w)                        # (w*p - w*g)^2 == w^2*(p-g)^2
    topk_vals, _ = jax.lax.top_k(per_joint, topk)              # online hard keypoint mining
    return jnp.mean(jnp.sum(topk_vals, axis=1) / topk)


def _reference(output, target, target_weight, use_target_weight, topk):
    """Pure-JAX port of JointsOHKMMSELoss.forward (mirrors the PyTorch op order)."""
    b, j = output.shape[0], output.shape[1]
    hp = output.reshape(b, j, -1).astype(jnp.float32)
    hg = target.reshape(b, j, -1).astype(jnp.float32)
    if use_target_weight:
        w = target_weight.reshape(b, j, 1).astype(jnp.float32)
        hp = hp * w
        hg = hg * w
    per_joint = 0.5 * jnp.mean((hp - hg) ** 2, axis=2)          # (b, j)
    topk_vals, _ = jax.lax.top_k(per_joint, topk)               # (b, topk)
    return jnp.mean(jnp.sum(topk_vals, axis=1) / topk)


if __name__ == "__main__":
    key = jax.random.PRNGKey(0)
    k1, k2, k3 = jax.random.split(key, 3)

    B, J, H, W = 2, 16, 16, 16          # small NCHW heatmaps; topk=8 <= J
    output = jax.random.normal(k1, (B, J, H, W), dtype=jnp.float32)
    target = jax.random.normal(k2, (B, J, H, W), dtype=jnp.float32)
    target_weight = jax.random.uniform(k3, (B, J, 1), dtype=jnp.float32)

    loss_fn_w = jax.jit(functools.partial(joints_ohkm_mse_loss,
                                          use_target_weight=True, topk=8))
    loss_fn_nw = jax.jit(lambda o, t: joints_ohkm_mse_loss(
        o, t, None, use_target_weight=False, topk=8))

    # f32, with target_weight
    loss_w = loss_fn_w(output, target, target_weight)
    jax.block_until_ready(loss_w)
    ref_w = _reference(output, target, target_weight, True, 8)
    assert jnp.allclose(loss_w, ref_w, rtol=1e-5, atol=1e-6), (loss_w, ref_w)

    # f32, without target_weight
    loss_nw = loss_fn_nw(output, target)
    jax.block_until_ready(loss_nw)
    ref_nw = _reference(output, target, None, False, 8)
    assert jnp.allclose(loss_nw, ref_nw, rtol=1e-5, atol=1e-6), (loss_nw, ref_nw)

    # bf16 inputs (exercises the sublane-16 tiling / f32-working-set budget path)
    out_bf = output.astype(jnp.bfloat16)
    tgt_bf = target.astype(jnp.bfloat16)
    loss_bf = loss_fn_w(out_bf, tgt_bf, target_weight)
    jax.block_until_ready(loss_bf)
    ref_bf = _reference(out_bf, tgt_bf, target_weight, True, 8)
    assert jnp.allclose(loss_bf, ref_bf, rtol=1e-4, atol=1e-6), (loss_bf, ref_bf)

    print("KERNEL_OK")
</pallas_src>

<mosaic_0001>
module attributes {stable_mosaic.version = 11 : i64} {
  func.func @_sse_rows_kernel(%arg0: i32, %arg1: memref<16x256xf32, #tpu.memory_space<vmem>>, %arg2: memref<16x256xf32, #tpu.memory_space<vmem>>, %arg3: memref<16x1xf32, #tpu.memory_space<vmem>>) attributes {dimension_semantics = [#tpu.dimension_semantics<parallel>], iteration_bounds = array<i64: 2>, scalar_prefetch = 0 : i64, scratch_operands = 0 : i64, tpu.core_type = #tpu.core_type<tc>, window_params = [{transform_indices = @transform_0, window_bounds = array<i64: 16, 256>}, {transform_indices = @transform_1, window_bounds = array<i64: 16, 256>}, {transform_indices = @transform_2, window_bounds = array<i64: 16, 1>}]} {
    %c0 = arith.constant 0 : index
    %c0_0 = arith.constant 0 : index
    %0 = vector.load %arg1[%c0, %c0_0] : memref<16x256xf32, #tpu.memory_space<vmem>>, vector<16x256xf32>
    %c0_1 = arith.constant 0 : index
    %c0_2 = arith.constant 0 : index
    %1 = vector.load %arg2[%c0_1, %c0_2] : memref<16x256xf32, #tpu.memory_space<vmem>>, vector<16x256xf32>
    %2 = arith.subf %0, %1 : vector<16x256xf32>
    %3 = arith.mulf %2, %2 : vector<16x256xf32>
    %cst = arith.constant dense<0.000000e+00> : vector<16xf32>
    %4 = vector.multi_reduction <add>, %3, %cst [1] : vector<16x256xf32> to vector<16xf32>
    %5 = vector.shape_cast %4 : vector<16xf32> to vector<16x1xf32>
    %c0_3 = arith.constant 0 : index
    %c0_4 = arith.constant 0 : index
    %6 = vector.load %arg3[%c0_3, %c0_4] : memref<16x1xf32, #tpu.memory_space<vmem>>, vector<16x1xf32>
    tpu.vector_store %arg3[%c0_3, %c0_4], %5 {strides = array<i32>} : memref<16x1xf32, #tpu.memory_space<vmem>>, vector<16x1xf32>,
    return
  }
  func.func @transform_0(%arg0: i32) -> (i32, i32) {
    %c0_i32 = arith.constant 0 : i32
    %c0_i32_0 = arith.constant 0 : i32
    return %arg0, %c0_i32 : i32, i32
  }
  func.func @transform_1(%arg0: i32) -> (i32, i32) {
    %c0_i32 = arith.constant 0 : i32
    %c0_i32_0 = arith.constant 0 : i32
    return %arg0, %c0_i32 : i32, i32
  }
  func.func @transform_2(%arg0: i32) -> (i32, i32) {
    %c0_i32 = arith.constant 0 : i32
    %c0_i32_0 = arith.constant 0 : i32
    return %arg0, %c0_i32 : i32, i32
  }
}

</mosaic_0001>

<bundles_post_ra>
// kernel: mul.1
= control target key start
LH: loop header
LB: loop body
LE: loop exit
PB: predicated region body
PF: predicated region fallthrough
CT: control target
= control target key end

     0   :  { %s56_s0 = inlined_call_operand.vmem [shape: f32[2,16,1], index: 0, kind: input, shape index: {}, may-alias: {0,1}]   ;;  %s57_s1 = inlined_call_operand.vmem [shape: f32[2,16,1], index: 1, kind: input, shape index: {}, may-alias: {0,1}]   ;;  %s58_s2 = inlined_call_operand.vmem [shape: f32[2,16,1], index: 2, kind: output, shape index: {}]  }
   0x1   :  { %v3_v0 = vld [vmem:[%s56_s0] sm:$0x1]  ;;  %v20_v2 = vld [vmem:[%s56_s0 + $0x1] sm:$0x1] }
   0x2   :  { %v4_v1 = vld [vmem:[%s57_s1] sm:$0x1]  ;;  %v21_v4 = vld [vmem:[%s57_s1 + $0x1] sm:$0x1] }
   0x3   :  { %v7_v3 = vmul.f32 %v4_v1, %v3_v0  ;;  %v16_v5 = vmul.f32 %v21_v4, %v20_v2 }
   0x5   :  { %9 = vst [vmem:[%s58_s2] sm:$0x1] %v7_v3 }
   0x6   :  { %22 = vst [vmem:[%s58_s2 + $0x1] sm:$0x1] %v16_v5 }

// kernel: mul.7
= control target key start
LH: loop header
LB: loop body
LE: loop exit
PB: predicated region body
PF: predicated region fallthrough
CT: control target
= control target key end

     0   :  { %s34_s0 = inlined_call_operand.vmem [shape: f32[2,16], index: 0, kind: input, shape index: {}]   ;;  %s35_s1 = inlined_call_operand.vmem [shape: f32[2,16], index: 1, kind: input, shape index: {}]   ;;  %s36_s2 = inlined_call_operand.vmem [shape: f32[2,16], index: 2, kind: output, shape index: {}]  }
   0x1   :  { %v3_v0 = vld [vmem:[%s34_s0] sm:$0x3] }
   0x2   :  { %v4_v1 = vld [vmem:[%s35_s1] sm:$0x3] }
   0x3   :  { %v7_v2 = vmul.f32 %v4_v1, %v3_v0 }
   0x5   :  { %9 = vst [vmem:[%s36_s2] sm:$0x3] %v7_v2 }

// kernel: joints_ohkm_mse_loss.1
= control target key start
LH: loop header
LB: loop body
LE: loop exit
PB: predicated region body
PF: predicated region fallthrough
CT: control target
= control target key end

     0   :  { %s316_s9 = smov 0   ;;  %s336_s0 = inlined_call_operand.vmem [shape: f32[32,256], index: 0, kind: input, shape index: {}]   ;;  %s337_s1 = inlined_call_operand.vmem [shape: f32[32,256], index: 1, kind: input, shape index: {}]   ;;  %s338_s2 = inlined_call_operand.vmem [shape: f32[32,1], index: 2, kind: output, shape index: {}]  }
   0x1 LB: > { %s268_s10 = sadd.s32 4294967295, %s299_s9   ;;  %p272_p0 = scmp.ge.s32.totalorder %s299_s9, 1  ;;  %s299_s9 = sphi %s316_s9, %s12_s9  }
   0x2   : > { %p126_p1 = scmp.lt.s32.totalorder %s299_s9, 3 }
   0x4   : > { %p127_p2 = pnand %p272_p0, %p126_p1 }
   0x5   : > { %s273_s11 = sshll.u32 (!%p127_p2), %s268_s10, 1 }
   0x6   : > { %130 = sbr.rel (%p127_p2) target bundleno = 147 (0x93), region = 28  ;;  %p156_p3 = scmp.lt.s32.totalorder (!%p127_p2), %s273_s11, 3 }
   0xb   : > { %s340_s11 = smov (!%p156_p3, %s273_s11), 3  ;;  %vm197_vm0 = vcmask 7168  }
   0xc   : > { %s283_s12 = sshll.u32 %s340_s11, 4  ;;  %s280_s19 = sshll.u32 %s340_s11, 3 }
   0xd   : > { %s160_s15 = scalar_lea.vmem %s336_s0, %s283_s12  ;;  %s167_s18 = scalar_lea.vmem %s337_s1, %s283_s12 }
   0xe   : > { %v175_v0 = vld [vmem:[%s160_s15] sm:$0xff]  ;;  %v176_v1 = vld [vmem:[%s160_s15 + $0x8] sm:$0xff]  ;;  %v177_v5 = vld [vmem:[%s160_s15 + $0x10] sm:$0xff]  ;;  %s173_s22 = scalar_lea.vmem %s338_s2, %s280_s19 }
   0xf   : > { %v179_v2 = vld [vmem:[%s167_s18] sm:$0xff]  ;;  %v180_v3 = vld [vmem:[%s167_s18 + $0x8] sm:$0xff]  ;;  %v178_v6 = vld [vmem:[%s160_s15 + $0x18] sm:$0xff] }
  0x10   : > { %v183_v4 = vsub.f32 %v175_v0, %v179_v2  ;;  %v184_v7 = vsub.f32 %v176_v1, %v180_v3  ;;  %v181_v8 = vld [vmem:[%s167_s18 + $0x10] sm:$0xff]  ;;  %v182_v9 = vld [vmem:[%s167_s18 + $0x18] sm:$0xff] }
  0x11   : > { %v185_v12 = vsub.f32 %v177_v5, %v181_v8  ;;  %v186_v13 = vsub.f32 %v178_v6, %v182_v9 }
  0x12   : > { %v187_v10 = vmul.f32 %v183_v4, %v183_v4  ;;  %v188_v11 = vmul.f32 %v184_v7, %v184_v7 }
  0x13   : > { %v189_v15 = vmul.f32 %v185_v12, %v185_v12  ;;  %v190_v16 = vmul.f32 %v186_v13, %v186_v13 }
  0x14   : > { %v191_v14 = vadd.f32 %v188_v11, %v187_v10 }
  0x15   : > { %v194_v17 = vadd.f32 %v190_v16, %v189_v15 }
  0x16   : > { %192 = vadd.xlane.f32.xlu0 %v191_v14 }
  0x1e   : > { %195 = vadd.xlane.f32.xlu0 %v194_v17 }
  0x89   : > { %v193_v18 = vpop.xlane.xlu0 %192 }
  0x8a   : > { %198 = vst.msk [vmem:[%s173_s22] sm:$0xff] %vm197_vm0, %v193_v18 }
  0x91   : > { %v196_v19 = vpop.xlane.xlu0 %195 }
  0x92   : > { %199 = vst.msk [vmem:[%s173_s22 + $0x8] sm:$0xff] %vm197_vm0, %v196_v19 }
  0x93 PF: > { %s12_s9 = sadd.s32 1, %s299_s9  }
  0x94   : > { %p9_p4 = scmp.ge.s32.totalorder %s12_s9, 4  }
  0x96   :  { %11 = sbr.rel (!%p9_p4) target bundleno = 1 (0x1), region = 61 }

</bundles_post_ra>
